<compile_context>
chip_gen: v5e
topology: v5e:2x2
jax: 0.10.0
libtpu: 0.0.40
codegen_flags: <defaults>
</compile_context>

<pallas_src>
import jax
import jax.numpy as jnp
from jax.experimental import pallas as pl
from jax.experimental.pallas import tpu as pltpu


# ----------------------------------------------------------------------------
# Tier 1: aliased no-op (moves ~0 bytes).
# ----------------------------------------------------------------------------
def _alias_noop_kernel(x_ref, o_ref):
    # Output HBM buffer is aliased to the input, so the data is already in
    # place.  touch() keeps the input->output dependency alive without any
    # data movement.
    del x_ref
    pltpu.touch(o_ref)


# ----------------------------------------------------------------------------
# Tier 2: single bulk HBM->HBM DMA (no VMEM staging, no grid).
# ----------------------------------------------------------------------------
def _hbm_dma_copy_kernel(x_ref, o_ref, sem):
    cp = pltpu.make_async_copy(x_ref, o_ref, sem)
    cp.start()
    cp.wait()


# ----------------------------------------------------------------------------
# Tier 3: lane-dense blocked VMEM copy (previously validated path).
# ----------------------------------------------------------------------------
def _copy_kernel(x_ref, o_ref):
    o_ref[...] = x_ref[...]


def _identity_pipelined_copy(x):
    orig_shape = x.shape
    total = x.size
    itemsize = x.dtype.itemsize

    # Dtype-aware sublane minimum for full vreg packing:
    # 8 rows for 4-byte, 16 for 2-byte (bf16/f16), 32 for 1-byte (int8/fp8).
    min_sub = max(8, 32 // max(itemsize, 1))
    lane = 128

    # Pad (rarely needed) so the flattened slab is lane- and sublane-aligned;
    # avoids a giant single full-array block for odd sizes.
    pad = (-total) % (min_sub * lane)
    flat = x.reshape(-1)
    if pad:
        flat = jnp.pad(flat, (0, pad))
    rows = flat.size // lane
    slab = flat.reshape(rows, lane)

    # ~4 MiB blocks: 2 arrays x 2 pipeline buffers = 16 MiB, fits the default
    # scoped VMEM on every generation (incl. v7x's 64 MiB physical VMEM), so
    # no vmem_limit_bytes override is needed.  Default 2-deep buffering.
    blk = max(min_sub, (4 * 1024 * 1024) // (lane * itemsize))
    if rows * lane * itemsize > 8 * 1024 * 1024:
        # Ensure >=2 grid steps so both v7x TensorCores contribute bandwidth.
        blk = min(blk, max(min_sub, (rows // 2) // min_sub * min_sub))
    blk = min(rows, (blk // min_sub) * min_sub)
    grid = (pl.cdiv(rows, blk),)

    out = pl.pallas_call(
        _copy_kernel,
        out_shape=jax.ShapeDtypeStruct((rows, lane), x.dtype),
        grid_spec=pl.GridSpec(
            grid=grid,
            in_specs=[pl.BlockSpec((blk, lane), lambda i: (i, 0))],
            out_specs=pl.BlockSpec((blk, lane), lambda i: (i, 0)),
        ),
        input_output_aliases={0: 0},
        compiler_params=pltpu.CompilerParams(
            dimension_semantics=("parallel",),
        ),
    )(slab)

    flat_out = out.reshape(-1)
    if pad:
        flat_out = flat_out[:total]
    return flat_out.reshape(orig_shape)


# ----------------------------------------------------------------------------
# Public wrapper: MyNormLayer.forward(x) -> x
# ----------------------------------------------------------------------------
def my_norm_layer_forward(x):
    """Pallas forward of MyNormLayer: identity (module has no params/buffers)."""
    # Tier 1: aliased no-op.
    try:
        y = pl.pallas_call(
            _alias_noop_kernel,
            out_shape=jax.ShapeDtypeStruct(x.shape, x.dtype),
            in_specs=[pl.BlockSpec(memory_space=pl.ANY)],
            out_specs=pl.BlockSpec(memory_space=pl.ANY),
            input_output_aliases={0: 0},
        )(x)
        return jax.block_until_ready(y)
    except Exception:
        pass

    # Tier 2: one direct HBM->HBM DMA.
    try:
        y = pl.pallas_call(
            _hbm_dma_copy_kernel,
            out_shape=jax.ShapeDtypeStruct(x.shape, x.dtype),
            in_specs=[pl.BlockSpec(memory_space=pl.ANY)],
            out_specs=pl.BlockSpec(memory_space=pl.ANY),
            scratch_shapes=[pltpu.SemaphoreType.DMA(())],
        )(x)
        return jax.block_until_ready(y)
    except Exception:
        pass

    # Tier 3: blocked VMEM copy (known-good path).
    return _identity_pipelined_copy(x)


if __name__ == "__main__":
    key = jax.random.PRNGKey(0)
    x = jax.random.normal(key, (2, 4, 16, 16), dtype=jnp.float32)

    y = my_norm_layer_forward(x)
    y = jax.block_until_ready(y)

    assert y.shape == x.shape and y.dtype == x.dtype
    assert bool(jnp.allclose(y, x)), "identity kernel mismatch"
    print("KERNEL_OK")
</pallas_src>

<mosaic_0001>
module attributes {stable_mosaic.version = 11 : i64} {
  func.func @_alias_noop_kernel(%arg0: memref<2x4x16x16xf32, #tpu.memory_space<any>>, %arg1: memref<2x4x16x16xf32, #tpu.memory_space<any>>) attributes {dimension_semantics = [], scalar_prefetch = 0 : i64, scratch_operands = 0 : i64, tpu.core_type = #tpu.core_type<tc>} {
    return
  }
}

module attributes {stable_mosaic.version = 11 : i64} {
  func.func @_hbm_dma_copy_kernel(%arg0: memref<2x4x16x16xf32, #tpu.memory_space<any>>, %arg1: memref<2x4x16x16xf32, #tpu.memory_space<any>>, %arg2: memref<!tpu.dma_semaphore, #tpu.memory_space<semaphore_mem>>) attributes {dimension_semantics = [], scalar_prefetch = 0 : i64, scratch_operands = 1 : i64, tpu.core_type = #tpu.core_type<tc>} {
    tpu.enqueue_dma source(%arg0 : memref<2x4x16x16xf32, #tpu.memory_space<any>>) target(%arg1 : memref<2x4x16x16xf32, #tpu.memory_space<any>>) target_semaphore(%arg2 : memref<!tpu.dma_semaphore, #tpu.memory_space<semaphore_mem>>)
    tpu.wait_dma2 semaphore(%arg2 : memref<!tpu.dma_semaphore, #tpu.memory_space<semaphore_mem>>) src(%arg0 : memref<2x4x16x16xf32, #tpu.memory_space<any>>) dst(%arg1 : memref<2x4x16x16xf32, #tpu.memory_space<any>>)
    return
  }
}

module attributes {stable_mosaic.version = 11 : i64} {
  func.func @_copy_kernel(%arg0: i32, %arg1: memref<16x128xf32, #tpu.memory_space<vmem>>, %arg2: memref<16x128xf32, #tpu.memory_space<vmem>>) attributes {dimension_semantics = [#tpu.dimension_semantics<parallel>], iteration_bounds = array<i64: 1>, scalar_prefetch = 0 : i64, scratch_operands = 0 : i64, tpu.core_type = #tpu.core_type<tc>, window_params = [{transform_indices = @transform_0, window_bounds = array<i64: 16, 128>}, {transform_indices = @transform_1, window_bounds = array<i64: 16, 128>}]} {
    %c0 = arith.constant 0 : index
    %c0_0 = arith.constant 0 : index
    %0 = vector.load %arg1[%c0, %c0_0] : memref<16x128xf32, #tpu.memory_space<vmem>>, vector<16x128xf32>
    %c0_1 = arith.constant 0 : index
    %c0_2 = arith.constant 0 : index
    %1 = vector.load %arg2[%c0_1, %c0_2] : memref<16x128xf32, #tpu.memory_space<vmem>>, vector<16x128xf32>
    tpu.vector_store %arg2[%c0_1, %c0_2], %0 {strides = array<i32>} : memref<16x128xf32, #tpu.memory_space<vmem>>, vector<16x128xf32>,
    return
  }
  func.func @transform_0(%arg0: i32) -> (i32, i32) {
    %c0_i32 = arith.constant 0 : i32
    %c0_i32_0 = arith.constant 0 : i32
    return %arg0, %c0_i32 : i32, i32
  }
  func.func @transform_1(%arg0: i32) -> (i32, i32) {
    %c0_i32 = arith.constant 0 : i32
    %c0_i32_0 = arith.constant 0 : i32
    return %arg0, %c0_i32 : i32, i32
  }
}

</mosaic_0001>

<bundles_post_ra>
// kernel: tpu_custom_call.1
= control target key start
LH: loop header
LB: loop body
LE: loop exit
PB: predicated region body
PF: predicated region fallthrough
CT: control target
= control target key end

     0   :  { %s16_s0 = inlined_call_operand.hbm [shape: f32[2,4,16,16], index: 0, kind: input, shape index: {}, may-alias: {0,1}]   ;;  %s17_s1 = inlined_call_operand.hbm [shape: f32[2,4,16,16], index: 1, kind: output, shape index: {}, may-alias: {0,1}]  }

// kernel: tpu_custom_call.1
= control target key start
LH: loop header
LB: loop body
LE: loop exit
PB: predicated region body
PF: predicated region fallthrough
CT: control target
= control target key end

     0   :  { %s34_s12 = smov [#allocation2]   ;;  %s35_s13 = smov [#allocation3]   ;;  %s53_s0 = inlined_call_operand.hbm [shape: f32[2,4,16,16], index: 0, kind: input, shape index: {}]   ;;  %s54_s1 = inlined_call_operand.hbm [shape: f32[2,4,16,16], index: 1, kind: output, shape index: {}]  }
   0x1   :  { %s10_s8 = sshll.u32 %s53_s0, 4  ;;  %s12_s11 = sshll.u32 %s54_s1, 4  ;;  %s11_s8 = int_to_ptr.hbm [resolvable:$true] %s10_s8  ;;  %s13_s11 = int_to_ptr.hbm [resolvable:$true] %s12_s11 }
   0x2   :  { %s36_s14 = smov 0  }
   0x3   :  { %16 = dma.general %s11_s8, 2048, %s13_s11, %s34_s12, %s35_s13, [#allocation4], %s36_s14, 0  }
   0x4   :  { %32 = dma.done.wait [#allocation2], 2048 }
   0x5   :  { %33 = vsyncadd [#allocation2], 4294965248 }
   0x6   :  { %22 = vsyncmov [#allocation2] }
   0x9   :  { %s23_s15 = vpop.sfrf %22 }
   0xa   :  { %p28_p0 = scmp.ne.s32.totalorder %s23_s15, 0 }
   0xc   :  { %27 = shalt.err (%p28_p0)  }

// kernel: tpu_custom_call.1
= control target key start
LH: loop header
LB: loop body
LE: loop exit
PB: predicated region body
PF: predicated region fallthrough
CT: control target
= control target key end

     0   :  { %6 = vsyncpa [#allocation3], 0  ;;  %s124_s0 = inlined_call_operand.hbm [shape: f32[16,128], index: 0, kind: input, shape index: {}, may-alias: {0,1}]   ;;  %s125_s1 = inlined_call_operand.hbm [shape: f32[16,128], index: 1, kind: output, shape index: {}, may-alias: {0,1}]  }
   0x1   :  { %7 = vsyncpa [#allocation4], 0  ;;  %s12_s8 = sshll.u32 %s124_s0, 4  ;;  %s104_s9 = smov [#allocation2]   ;;  %s13_s8 = int_to_ptr.hbm [resolvable:$true] %s12_s8 }
   0x2   :  { %s14_s10 = sshll.u32 %s104_s9, 4  ;;  %s105_s11 = smov 128   ;;  %s15_s10 = int_to_ptr.vmem [resolvable:$true] %s14_s10 }
   0x3   :  { %s106_s12 = smov 8  }
   0x4   :  { %20 = dma.hbm_to_vmem [thread:$0]  %s13_s8, 256, %s15_s10, [#allocation3], %s105_s11, %s105_s11, %s106_s12  }
   0x5   :  { %100 = dma.done.wait [#allocation3], 256  }
   0x6   :  { %101 = vsyncadd [#allocation3], 4294967040  ;;  %s107_s13 = smov [#allocation5]   ;;  %s35_s17 = sshll.u32 %s125_s1, 4  ;;  %v25_v0 = vld [vmem:[#allocation2] sm:$0xff]  ;;  %v26_v1 = vld [vmem:[#allocation2 + $0x8] sm:$0xff]  ;;  %s36_s17 = int_to_ptr.hbm [resolvable:$true] %s35_s17 }
   0x7   :  { %s33_s14 = sshll.u32 %s107_s13, 4  ;;  %27 = vst [vmem:[#allocation5] sm:$0xff] %v25_v0  ;;  %s34_s14 = int_to_ptr.vmem [resolvable:$true] %s33_s14 }
   0x8   :  { %28 = vst [vmem:[#allocation5 + $0x8] sm:$0xff] %v26_v1 }
   0x9   :  { %41 = dma.vmem_to_hbm [thread:$0]  %s34_s14, 256, %s36_s17, [#allocation4], %s105_s11, %s105_s11, %s106_s12  }
   0xa   :  { %102 = dma.done.wait [#allocation4], 256  }
   0xb   :  { %103 = vsyncadd [#allocation4], 4294967040 }
   0xc   :  { %46 = vsyncpa [#allocation3], 1 }
   0xd   :  { %47 = vsyncpa [#allocation4], 1 }

</bundles_post_ra>
